<compile_context>
chip_gen: v6e
topology: v6e:2x2x1
jax: 0.10.0
libtpu: 0.0.40
codegen_flags: <defaults>
</compile_context>

<pallas_src>
import functools
import math

import jax
import jax.numpy as jnp
import numpy as np
from jax.experimental import pallas as pl
from jax.experimental.pallas import tpu as pltpu

EPS = 1e-8
LANES = 128
MAX_ROWS_PER_BLOCK = 1024  # packed rows per grid step for large inputs


def _cdiv(a, b):
    return (a + b - 1) // b


# ----------------------------- kernels --------------------------------
def _rmsnorm_packed_kernel(x_ref, scale_ref, g_ref, o_ref, *, d):
    # x_ref: (rows_blk, L) with pack = L // d logical rows folded into the lane axis
    # (consecutive d-lane groups). g_ref: (L, L) block-diagonal ones matrix.
    # (x*x) @ G gives every lane the sum of squares of its own logical row,
    # already broadcast across that row's d lanes (rides the otherwise-idle MXU).
    x = x_ref[...].astype(jnp.float32)
    ssq = jnp.dot(x * x, g_ref[...],
                  preferred_element_type=jnp.float32,
                  precision=jax.lax.Precision.HIGHEST)
    norm = jnp.sqrt(ssq) * (1.0 / math.sqrt(d))           # ||x|| / sqrt(d)
    o_ref[...] = (scale_ref[...] * x / (norm + EPS)).astype(o_ref.dtype)


def _rmsnorm_plain_kernel(x_ref, scale_ref, o_ref, *, d):
    # Fallback for feature dims that don't pack into 128 lanes (or are already
    # lane-dense, i.e. multiples of 128).
    x = x_ref[...].astype(jnp.float32)
    ssq = jnp.sum(x * x, axis=-1, keepdims=True)
    norm = jnp.sqrt(ssq) * (1.0 / math.sqrt(d))
    o_ref[...] = (scale_ref[...] * x / (norm + EPS)).astype(o_ref.dtype)


# ----------------------------- wrapper --------------------------------
def rmsnorm(x, scale):
    """RMSNorm over the last axis of x. x: (..., D), scale: (D,)."""
    orig_shape = x.shape
    d = orig_shape[-1]
    rows = int(np.prod(orig_shape[:-1])) if len(orig_shape) > 1 else 1
    x2 = x.reshape(rows, d)

    # Lane packing: fold `pack` logical rows into the 128-lane axis when D < 128
    # and divides 128. This is a pure reshape (no data movement in HBM).
    pack = LANES // d if (d < LANES and LANES % d == 0) else 1
    lanes = pack * d

    rows_p1 = _cdiv(rows, pack) * pack
    if rows_p1 != rows:
        x2 = jnp.pad(x2, ((0, rows_p1 - rows), (0, 0)))   # zero rows -> zero output
    prows = rows_p1 // pack
    xp = x2.reshape(prows, lanes)

    # Row-block sizing: single grid step for small inputs, 1024-packed-row tiles
    # (512 KiB f32) for large ones; cdiv + pad keeps the tail pipelined.
    rows_blk = prows if prows <= MAX_ROWS_PER_BLOCK else MAX_ROWS_PER_BLOCK
    n_blocks = _cdiv(prows, rows_blk)
    prows_pad = n_blocks * rows_blk
    if prows_pad != prows:
        xp = jnp.pad(xp, ((0, prows_pad - prows), (0, 0)))

    scale_p = jnp.tile(scale.astype(jnp.float32), pack).reshape(1, lanes)

    if pack > 1:
        idx = jnp.arange(lanes)
        g = (idx[:, None] // d == idx[None, :] // d).astype(jnp.float32)
        kernel = functools.partial(_rmsnorm_packed_kernel, d=d)
        in_specs = [
            pl.BlockSpec((rows_blk, lanes), lambda i: (i, 0)),   # x (pipelined)
            pl.BlockSpec((1, lanes), lambda i: (0, 0)),          # scale (resident)
            pl.BlockSpec((lanes, lanes), lambda i: (0, 0)),      # G (resident)
        ]
        args = (xp, scale_p, g)
    else:
        kernel = functools.partial(_rmsnorm_plain_kernel, d=d)
        in_specs = [
            pl.BlockSpec((rows_blk, lanes), lambda i: (i, 0)),
            pl.BlockSpec((1, lanes), lambda i: (0, 0)),
        ]
        args = (xp, scale_p)

    out_p = pl.pallas_call(
        kernel,
        out_shape=jax.ShapeDtypeStruct((prows_pad, lanes), x.dtype),
        grid_spec=pltpu.PrefetchScalarGridSpec(
            num_scalar_prefetch=0,
            grid=(n_blocks,),
            in_specs=in_specs,
            out_specs=pl.BlockSpec((rows_blk, lanes), lambda i: (i, 0)),
        ),
        compiler_params=pltpu.CompilerParams(
            dimension_semantics=("parallel",),
        ),
    )(*args)

    out = out_p.reshape(prows_pad * pack, d)[:rows]
    return out.reshape(orig_shape)


# ------------------------- pure-JAX reference --------------------------
def rmsnorm_ref(x, scale):
    norm = jnp.linalg.norm(x, axis=-1, keepdims=True) * (1.0 / math.sqrt(x.shape[-1]))
    return scale * x / (norm + EPS)


# ------------------------------ main -----------------------------------
if __name__ == "__main__":
    B, S, D = 2, 8, 32

    key = jax.random.PRNGKey(0)
    kx, ks = jax.random.split(key)
    x = jax.random.normal(kx, (B, S, D), jnp.float32)
    # Module initializes scale to ones; use a non-trivial scale so the broadcast
    # path is actually exercised (forward semantics unchanged).
    scale = 1.0 + 0.1 * jax.random.normal(ks, (D,), jnp.float32)

    out = jax.block_until_ready(rmsnorm(x, scale))

    ref = rmsnorm_ref(x, scale)
    np.testing.assert_allclose(np.asarray(out), np.asarray(ref), atol=1e-4, rtol=1e-4)

    print("KERNEL_OK")
</pallas_src>

<mosaic_0001>
module attributes {stable_mosaic.version = 11 : i64} {
  func.func @_rmsnorm_packed_kernel(%arg0: i32, %arg1: memref<4x128xf32, #tpu.memory_space<vmem>>, %arg2: memref<1x128xf32, #tpu.memory_space<vmem>>, %arg3: memref<128x128xf32, #tpu.memory_space<vmem>>, %arg4: memref<4x128xf32, #tpu.memory_space<vmem>>) attributes {dimension_semantics = [#tpu.dimension_semantics<parallel>], iteration_bounds = array<i64: 1>, scalar_prefetch = 0 : i64, scratch_operands = 0 : i64, tpu.core_type = #tpu.core_type<tc>, window_params = [{transform_indices = @transform_0, window_bounds = array<i64: 4, 128>}, {pipeline_mode = #tpu.pipeline_mode<synchronous>, transform_indices = @transform_1, window_bounds = array<i64: 1, 128>}, {pipeline_mode = #tpu.pipeline_mode<synchronous>, transform_indices = @transform_2, window_bounds = array<i64: 128, 128>}, {transform_indices = @transform_3, window_bounds = array<i64: 4, 128>}]} {
    %c0 = arith.constant 0 : index
    %c0_0 = arith.constant 0 : index
    %0 = vector.load %arg1[%c0, %c0_0] : memref<4x128xf32, #tpu.memory_space<vmem>>, vector<4x128xf32>
    %1 = arith.mulf %0, %0 : vector<4x128xf32>
    %c0_1 = arith.constant 0 : index
    %c0_2 = arith.constant 0 : index
    %2 = vector.load %arg3[%c0_1, %c0_2] : memref<128x128xf32, #tpu.memory_space<vmem>>, vector<128x128xf32>
    %cst = arith.constant dense<0.000000e+00> : vector<4x128xf32>
    %3 = tpu.matmul %1, %2, %cst {dimension_numbers = #tpu.dot_dimension_numbers<[1], [0], [0], [1], [0, 0, 1, 1], [], []>, precision = #tpu.contract_precision<fp32>} : vector<4x128xf32>, vector<128x128xf32>, vector<4x128xf32> -> vector<4x128xf32>
    %4 = math.sqrt %3 : vector<4x128xf32>
    %cst_3 = arith.constant 0.176776692 : f32
    %5 = vector.broadcast %cst_3 : f32 to vector<4x128xf32>
    %6 = arith.mulf %4, %5 : vector<4x128xf32>
    %c0_4 = arith.constant 0 : index
    %c0_5 = arith.constant 0 : index
    %7 = vector.load %arg2[%c0_4, %c0_5] : memref<1x128xf32, #tpu.memory_space<vmem>>, vector<1x128xf32>
    %8 = vector.broadcast %7 : vector<1x128xf32> to vector<4x128xf32>
    %9 = arith.mulf %8, %0 : vector<4x128xf32>
    %cst_6 = arith.constant 9.99999993E-9 : f32
    %10 = vector.broadcast %cst_6 : f32 to vector<4x128xf32>
    %11 = arith.addf %6, %10 : vector<4x128xf32>
    %12 = arith.divf %9, %11 : vector<4x128xf32>
    %c0_7 = arith.constant 0 : index
    %c0_8 = arith.constant 0 : index
    %13 = vector.load %arg4[%c0_7, %c0_8] : memref<4x128xf32, #tpu.memory_space<vmem>>, vector<4x128xf32>
    tpu.vector_store %arg4[%c0_7, %c0_8], %12 {strides = array<i32>} : memref<4x128xf32, #tpu.memory_space<vmem>>, vector<4x128xf32>,
    return
  }
  func.func @transform_0(%arg0: i32) -> (i32, i32) {
    %c0_i32 = arith.constant 0 : i32
    %c0_i32_0 = arith.constant 0 : i32
    return %arg0, %c0_i32 : i32, i32
  }
  func.func @transform_1(%arg0: i32) -> (i32, i32) {
    %c0_i32 = arith.constant 0 : i32
    %c0_i32_0 = arith.constant 0 : i32
    %c0_i32_1 = arith.constant 0 : i32
    return %c0_i32, %c0_i32_0 : i32, i32
  }
  func.func @transform_2(%arg0: i32) -> (i32, i32) {
    %c0_i32 = arith.constant 0 : i32
    %c0_i32_0 = arith.constant 0 : i32
    %c0_i32_1 = arith.constant 0 : i32
    return %c0_i32, %c0_i32_0 : i32, i32
  }
  func.func @transform_3(%arg0: i32) -> (i32, i32) {
    %c0_i32 = arith.constant 0 : i32
    %c0_i32_0 = arith.constant 0 : i32
    return %arg0, %c0_i32 : i32, i32
  }
}

</mosaic_0001>

<bundles_post_ra>
// kernel: tpu_custom_call.1
= control target key start
LH: loop header
LB: loop body
LE: loop exit
PB: predicated region body
PF: predicated region fallthrough
CT: control target
= control target key end

     0   :  { %8 = vsyncpa [#allocation3], 0  ;;  %s1533_s0 = inlined_call_operand.hbm [shape: f32[4,128], index: 0, kind: input, shape index: {}]   ;;  %s1534_s1 = inlined_call_operand.vmem [shape: f32[1,128], index: 1, kind: input, shape index: {}]   ;;  %s1535_s2 = inlined_call_operand.hbm [shape: f32[128,128], index: 2, kind: input, shape index: {}]   ;;  %s1536_s3 = inlined_call_operand.hbm [shape: f32[4,128], index: 3, kind: output, shape index: {}]  }
   0x1   :  { %9 = vsyncpa [#allocation6], 0 }
   0x2   :  { %10 = vsyncpa [#allocation4], 0  ;;  %s1126_s12 = smov [#allocation2]   ;;  %s1127_s14 = smov [#allocation5]  }
   0x3   :  { %s17_s13 = sshll.u32 %s1126_s12, 4  ;;  %s28_s15 = sshll.u32 %s1127_s14, 4  ;;  %s18_s13 = int_to_ptr.vmem [resolvable:$true] %s17_s13  ;;  %s29_s15 = int_to_ptr.vmem [resolvable:$true] %s28_s15 }
   0x4   :  { %s1068_s16 = scalar_lea.vmem %s18_s13, 64  ;;  %p1073_p1 = scmp.lt.s32.totalorder %s18_s13, %s18_s13 }
   0x5   :  { %p1069_p0 = scmp.ne.s32.totalorder %s18_s13, %s1068_s16  ;;  %p1074_p2 = scmp.lt.s32.totalorder %s1068_s16, %s1068_s16 }
   0x7   :  { %p1075_p3 = por %p1074_p2, %p1073_p1 }
   0x9   :  { %p1076_p4 = pnand %p1075_p3, %p1069_p0 }
   0xb   :  { %1079 = shalt.err (!%p1076_p4)
}
   0xc   :  { %20 = dma.hbm_to_vmem [thread:$0]  %s1533_s0, 64, %s18_s13, [#allocation3]  }
   0xd   :  { %s1088_s19 = scalar_lea.vmem %s29_s15, 2048  ;;  %p1093_p6 = scmp.lt.s32.totalorder %s29_s15, %s29_s15 }
   0xe   :  { %p1089_p5 = scmp.ne.s32.totalorder %s29_s15, %s1088_s19  ;;  %p1094_p7 = scmp.lt.s32.totalorder %s1088_s19, %s1088_s19 }
  0x10   :  { %p1095_p8 = por %p1094_p7, %p1093_p6 }
  0x12   :  { %p1096_p9 = pnand %p1095_p8, %p1089_p5 }
  0x14   :  { %1099 = shalt.err (!%p1096_p9)
}
  0x15   :  { %s1128_s20 = smov 128   ;;  %s1129_s21 = smov 8  }
  0x16   :  { %34 = dma.hbm_to_vmem [thread:$0]  %s1535_s2, 2048, %s29_s15, [#allocation6], %s1128_s20, %s1128_s20, %s1129_s21  }
  0x17   :  { %1120 = dma.done.wait [#allocation3], 64  }
  0x18   :  { %1121 = vsyncadd [#allocation3], 4294967232 }
  0x19   :  { %1122 = dma.done.wait [#allocation6], 2048  }
  0x1a   :  { %1123 = vsyncadd [#allocation6], 4294965248  ;;  %v1130_v0 = vmov 0.0   ;;  %vm1131_vm0 = vmmov 0   ;;  %v58_v1 = vld [vmem:[#allocation5 + $0x78] sm:$0xff]  ;;  %v57_v2 = vld [vmem:[#allocation5 + $0x70] sm:$0xff] }
  0x1b   :  { %839 = vmatprep.subr.mxu0 %v1130_v0  ;;  %874 = vmatprep.subr.mxu1 %v1130_v0  ;;  %v56_v3 = vld [vmem:[#allocation5 + $0x68] sm:$0xff]  ;;  %v1165_v4 = vand.u32 4294901760, %v58_v1  ;;  %v1167_v5 = vand.u32 4294901760, %v57_v2  ;;  %v55_v7 = vld [vmem:[#allocation5 + $0x60] sm:$0xff]  ;;  %v54_v8 = vld [vmem:[#allocation5 + $0x58] sm:$0xff]  ;;  %s1132_s24 = smov [#allocation7]  }
  0x1c   :  { %871 = vmatprep.mubr.msk.f32.mxu0 %vm1131_vm0, %v1130_v0  ;;  %906 = vmatprep.mubr.msk.f32.mxu1 %vm1131_vm0, %v1130_v0  ;;  %v1169_v6 = vand.u32 4294901760, %v56_v3  ;;  %v53_v9 = vld [vmem:[#allocation5 + $0x50] sm:$0xff]  ;;  %v1171_v10 = vand.u32 4294901760, %v55_v7  ;;  %v1173_v11 = vand.u32 4294901760, %v54_v8  ;;  %v52_v13 = vld [vmem:[#allocation5 + $0x48] sm:$0xff]  ;;  %v51_v14 = vld [vmem:[#allocation5 + $0x40] sm:$0xff] }
  0x1d   :  { %v1175_v12 = vand.u32 4294901760, %v53_v9  ;;  %840 = vmatpush3.msra.mxu0 %v1165_v4  ;;  %v1179_v15 = vsub.f32 %v58_v1, %v1165_v4  ;;  %v1182_v16 = vsub.f32 %v57_v2, %v1167_v5  ;;  %v1184_v17 = vand.u32 4294901760, %v52_v13  ;;  %v50_v19 = vld [vmem:[#allocation5 + $0x38] sm:$0xff]  ;;  %v49_v26 = vld [vmem:[#allocation5 + $0x30] sm:$0xff]  ;;  %v48_v34 = vld [vmem:[#allocation5 + $0x28] sm:$0xff]  ;;  %s726_s25 = sshll.u32 %s1132_s24, 4  ;;  %s727_s25 = int_to_ptr.vmem [resolvable:$true] %s726_s25 }
  0x1e   :  { %v1187_v18 = vsub.f32 %v56_v3, %v1169_v6  ;;  %841 = vmatprep.subr.mxu0 %v1130_v0  ;;  %v1191_v20 = vsub.f32 %v55_v7, %v1171_v10  ;;  %v1194_v21 = vsub.f32 %v54_v8, %v1173_v11  ;;  %v1200_v25 = vand.u32 4294901760, %v51_v14  ;;  %v47_v41 = vld [vmem:[#allocation5 + $0x20] sm:$0xff]  ;;  %v1245_v48 = vld [vmem:[#allocation2] sm:$0xf]  ;;  %v45_v54 = vld [vmem:[#allocation5 + $0x10] sm:$0xff]  ;;  %s1100_s26 = scalar_lea.vmem %s727_s25, 64  ;;  %p1105_p11 = scmp.lt.s32.totalorder %s727_s25, %s727_s25 }
  0x1f   :  { %842 = vmatpush3.msra.mxu0 %v1167_v5  ;;  %v153_v22 = vand.u32 4294901760, %v1179_v15  ;;  %v160_v23 = vand.u32 4294901760, %v1182_v16  ;;  %v1204_v28 = vand.u32 4294901760, %v50_v19  ;;  %v1208_v30 = vsub.f32 %v53_v9, %v1175_v12  ;;  %v46_v50 = vld [vmem:[#allocation5 + $0x18] sm:$0xff]  ;;  %v44_v61 = vld [vmem:[#allocation5 + $0x8] sm:$0xff]  ;;  %v43_v8 = vld [vmem:[#allocation5] sm:$0xff]  ;;  %p1101_p10 = scmp.ne.s32.totalorder %s727_s25, %s1100_s26  ;;  %p1106_p12 = scmp.lt.s32.totalorder %s1100_s26, %s1100_s26 }
  0x20   :  { %v167_v24 = vand.u32 4294901760, %v1187_v18  ;;  %843 = vmatprep.subr.mxu0 %v1130_v0  ;;  %v174_v27 = vand.u32 4294901760, %v1191_v20  ;;  %v181_v29 = vand.u32 4294901760, %v1194_v21  ;;  %v1221_v35 = vsub.f32 %v52_v13, %v1184_v17 }
  0x21   :  { %844 = vmatpush3.msra.mxu0 %v1169_v6  ;;  %v154_v31 = vsub.f32 %v1179_v15, %v153_v22  ;;  %v161_v32 = vsub.f32 %v1182_v16, %v160_v23  ;;  %v1224_v36 = vand.u32 4294901760, %v49_v26  ;;  %v188_v40 = vand.u32 4294901760, %v1208_v30  ;;  %p1107_p13 = por %p1106_p12, %p1105_p11 }
  0x22   :  { %v168_v33 = vsub.f32 %v1187_v18, %v167_v24  ;;  %845 = vmatprep.subr.mxu0 %v1130_v0  ;;  %v175_v39 = vsub.f32 %v1191_v20, %v174_v27  ;;  %v1232_v42 = vand.u32 4294901760, %v48_v34  ;;  %v1235_v43 = vsub.f32 %v51_v14, %v1200_v25 }
  0x23   :  { %846 = vmatpush3.msra.mxu0 %v1171_v10  ;;  %v155_v37 = vand.u32 4294901760, %v154_v31  ;;  %v162_v38 = vand.u32 4294901760, %v161_v32  ;;  %v182_v45 = vsub.f32 %v1194_v21, %v181_v29  ;;  %v195_v46 = vand.u32 4294901760, %v1221_v35  ;;  %p1108_p0 = pnand %p1107_p13, %p1101_p10 }
  0x24   :  { %847 = vmatprep.subr.mxu0 %v1130_v0  ;;  %v169_v44 = vand.u32 4294901760, %v168_v33  ;;  %v1243_v47 = vsub.f32 %v50_v19, %v1204_v28  ;;  %v1249_v49 = vand.u32 4294901760, %v47_v41  ;;  %v176_v51 = vand.u32 4294901760, %v175_v39 }
  0x25   :  { %848 = vmatpush3.msra.mxu0 %v1173_v11  ;;  %875 = vmatpush3.msra.mxu1 %v155_v37  ;;  %v189_v52 = vsub.f32 %v1208_v30, %v188_v40  ;;  %v202_v53 = vand.u32 4294901760, %v1235_v43  ;;  %v1257_v55 = vsub.f32 %v49_v26, %v1224_v36  ;;  %v42_v57 = vmul.f32 %v1245_v48, %v1245_v48 }
  0x26   :  { %849 = vmatprep.subr.mxu0 %v1130_v0  ;;  %876 = vmatprep.subr.mxu1 %v1130_v0  ;;  %v209_v56 = vand.u32 4294901760, %v1243_v47  ;;  %v183_v58 = vand.u32 4294901760, %v182_v45  ;;  %v196_v59 = vsub.f32 %v1221_v35, %v195_v46  ;;  %v1268_v60 = vand.u32 4294901760, %v46_v50 }
  0x27   :  { %850 = vmatpush3.msra.mxu0 %v1175_v12  ;;  %877 = vmatpush3.msra.mxu1 %v162_v38  ;;  %v1271_v62 = vsub.f32 %v48_v34, %v1232_v42  ;;  %v1275_v63 = vand.u32 4294901760, %v45_v54  ;;  %v1277_v1 = vand.u32 4294901760, %v42_v57  ;;  %v190_v2 = vand.u32 4294901760, %v189_v52 }
  0x28   :  { %851 = vmatprep.subr.mxu0 %v1130_v0  ;;  %878 = vmatprep.subr.mxu1 %v1130_v0  ;;  %v203_v3 = vsub.f32 %v1235_v43, %v202_v53  ;;  %v216_v7 = vand.u32 4294901760, %v1257_v55  ;;  %v1285_v9 = vsub.f32 %v47_v41, %v1249_v49  ;;  %v210_v13 = vsub.f32 %v1243_v47, %v209_v56 }
  0x29   :  { %852 = vmatpush3.msra.mxu0 %v1184_v17  ;;  %879 = vmatpush3.msra.mxu1 %v169_v44  ;;  %v1292_v14 = vand.u32 4294901760, %v44_v61  ;;  %v197_v19 = vand.u32 4294901760, %v196_v59  ;;  %v223_v26 = vand.u32 4294901760, %v1271_v62  ;;  %v1297_v31 = vsub.f32 %v42_v57, %v1277_v1 }
  0x2a   :  { %853 = vmatprep.subr.mxu0 %v1130_v0  ;;  %880 = vmatprep.subr.mxu1 %v1130_v0  ;;  %v1300_v32 = vsub.f32 %v46_v50, %v1268_v60  ;;  %v1304_v33 = vand.u32 4294901760, %v43_v8  ;;  %v204_v34 = vand.u32 4294901760, %v203_v3  ;;  %v217_v37 = vsub.f32 %v1257_v55, %v216_v7 }
  0x2b   :  { %854 = vmatpush3.msra.mxu0 %v1200_v25  ;;  %881 = vmatpush3.msra.mxu1 %v176_v51  ;;  %v230_v38 = vand.u32 4294901760, %v1285_v9  ;;  %v1312_v39 = vsub.f32 %v45_v54, %v1275_v63  ;;  %v211_v41 = vand.u32 4294901760, %v210_v13  ;;  %v224_v44 = vsub.f32 %v1271_v62, %v223_v26 }
  0x2c   :  { %855 = vmatprep.subr.mxu0 %v1130_v0  ;;  %882 = vmatprep.subr.mxu1 %v1130_v0  ;;  %v142_v45 = vand.u32 4294901760, %v1297_v31  ;;  %v237_v50 = vand.u32 4294901760, %v1300_v32  ;;  %v1323_v51 = vsub.f32 %v44_v61, %v1292_v14  ;;  %v218_v52 = vand.u32 4294901760, %v217_v37 }
  0x2d   :  { %856 = vmatpush3.msra.mxu0 %v1204_v28  ;;  %883 = vmatpush3.msra.mxu1 %v183_v58  ;;  %v231_v54 = vsub.f32 %v1285_v9, %v230_v38  ;;  %v244_v57 = vand.u32 4294901760, %v1312_v39  ;;  %v1333_v58 = vsub.f32 %v43_v8, %v1304_v33  ;;  %v225_v59 = vand.u32 4294901760, %v224_v44 }
  0x2e   :  { %857 = vmatprep.subr.mxu0 %v1130_v0  ;;  %884 = vmatprep.subr.mxu1 %v1130_v0  ;;  %v143_v61 = vsub.f32 %v1297_v31, %v142_v45  ;;  %v251_v3 = vand.u32 4294901760, %v1323_v51 }
  0x2f   :  { %858 = vmatpush3.msra.mxu0 %v1224_v36  ;;  %885 = vmatpush3.msra.mxu1 %v190_v2  ;;  %v238_v2 = vsub.f32 %v1300_v32, %v237_v50  ;;  %v232_v8 = vand.u32 4294901760, %v231_v54  ;;  %v245_v13 = vsub.f32 %v1312_v39, %v244_v57 }
  0x30   :  { %859 = vmatprep.subr.mxu0 %v1130_v0  ;;  %886 = vmatprep.subr.mxu1 %v1130_v0 }
  0x31   :  { %860 = vmatpush3.msra.mxu0 %v1232_v42  ;;  %887 = vmatpush3.msra.mxu1 %v197_v19  ;;  %v258_v19 = vand.u32 4294901760, %v1333_v58  ;;  %v239_v37 = vand.u32 4294901760, %v238_v2  ;;  %v246_v44 = vand.u32 4294901760, %v245_v13 }
  0x32   :  { %861 = vmatprep.subr.mxu0 %v1130_v0  ;;  %888 = vmatprep.subr.mxu1 %v1130_v0 }
  0x33   :  { %862 = vmatpush3.msra.mxu0 %v1249_v49  ;;  %889 = vmatpush3.msra.mxu1 %v204_v34  ;;  %v144_v34 = vand.u32 4294901760, %v143_v61 }
  0x34   :  { %863 = vmatprep.subr.mxu0 %v1130_v0  ;;  %890 = vmatprep.subr.mxu1 %v1130_v0 }
  0x35   :  { %864 = vmatpush3.msra.mxu0 %v1268_v60  ;;  %891 = vmatpush3.msra.mxu1 %v211_v41  ;;  %v252_v41 = vsub.f32 %v1323_v51, %v251_v3 }
  0x36   :  { %865 = vmatprep.subr.mxu0 %v1130_v0  ;;  %892 = vmatprep.subr.mxu1 %v1130_v0 }
  0x37   :  { %866 = vmatpush3.msra.mxu0 %v1275_v63  ;;  %893 = vmatpush3.msra.mxu1 %v218_v52  ;;  %v259_v52 = vsub.f32 %v1333_v58, %v258_v19  ;;  %v253_v54 = vand.u32 4294901760, %v252_v41 }
  0x38   :  { %867 = vmatprep.subr.mxu0 %v1130_v0  ;;  %894 = vmatprep.subr.mxu1 %v1130_v0 }
  0x39   :  { %868 = vmatpush3.msra.mxu0 %v1292_v14  ;;  %895 = vmatpush3.msra.mxu1 %v225_v59  ;;  %v260_v59 = vand.u32 4294901760, %v259_v52 }
  0x3a   :  { %869 = vmatprep.subr.mxu0 %v1130_v0  ;;  %896 = vmatprep.subr.mxu1 %v1130_v0 }
  0x3b   :  { %870 = vmatpush3.msra.mxu0 %v1304_v33  ;;  %897 = vmatpush3.msra.mxu1 %v232_v8 }
  0x3c   :  { %898 = vmatprep.subr.mxu1 %v1130_v0  ;;  %909 = vmatprep.subr.mxu0 %v1130_v0 }
  0x3d   :  { %872 = vmatmul.mubr.f32.vlgmr.msra.gmra.mxu0 %v144_v34  ;;  %899 = vmatpush3.msra.mxu1 %v239_v37 }
  0x3e   :  { %910 = vmatpush3.msra.mxu0 %v1179_v15  ;;  %900 = vmatprep.subr.mxu1 %v1130_v0 }
  0x3f   :  { %911 = vmatprep.subr.mxu0 %v1130_v0  ;;  %901 = vmatpush3.msra.mxu1 %v246_v44 }
  0x40   :  { %912 = vmatpush3.msra.mxu0 %v1182_v16  ;;  %902 = vmatprep.subr.mxu1 %v1130_v0 }
  0x41   :  { %913 = vmatprep.subr.mxu0 %v1130_v0  ;;  %903 = vmatpush3.msra.mxu1 %v253_v54 }
  0x42   :  { %914 = vmatpush3.msra.mxu0 %v1187_v18  ;;  %904 = vmatprep.subr.mxu1 %v1130_v0 }
  0x43   :  { %915 = vmatprep.subr.mxu0 %v1130_v0  ;;  %905 = vmatpush3.msra.mxu1 %v260_v59 }
  0x44   :  { %916 = vmatpush3.msra.mxu0 %v1191_v20  ;;  %907 = vmatmul.mubr.f32.vlgmr.msra.gmra.mxu1 %v1277_v1 }
  0x45   :  { %917 = vmatprep.subr.mxu0 %v1130_v0  ;;  %944 = vmatprep.subr.mxu1 %v1130_v0 }
  0x46   :  { %918 = vmatpush3.msra.mxu0 %v1194_v21  ;;  %945 = vmatpush3.msra.mxu1 %v1165_v4 }
  0x47   :  { %919 = vmatprep.subr.mxu0 %v1130_v0  ;;  %946 = vmatprep.subr.mxu1 %v1130_v0 }
  0x48   :  { %920 = vmatpush3.msra.mxu0 %v1208_v30  ;;  %947 = vmatpush3.msra.mxu1 %v1167_v5 }
  0x49   :  { %921 = vmatprep.subr.mxu0 %v1130_v0  ;;  %948 = vmatprep.subr.mxu1 %v1130_v0 }
  0x4a   :  { %922 = vmatpush3.msra.mxu0 %v1221_v35  ;;  %949 = vmatpush3.msra.mxu1 %v1169_v6 }
  0x4b   :  { %923 = vmatprep.subr.mxu0 %v1130_v0  ;;  %950 = vmatprep.subr.mxu1 %v1130_v0 }
  0x4c   :  { %924 = vmatpush3.msra.mxu0 %v1235_v43  ;;  %951 = vmatpush3.msra.mxu1 %v1171_v10 }
  0x4d   :  { %925 = vmatprep.subr.mxu0 %v1130_v0  ;;  %952 = vmatprep.subr.mxu1 %v1130_v0 }
  0x4e   :  { %926 = vmatpush3.msra.mxu0 %v1243_v47  ;;  %953 = vmatpush3.msra.mxu1 %v1173_v11 }
  0x4f   :  { %927 = vmatprep.subr.mxu0 %v1130_v0  ;;  %954 = vmatprep.subr.mxu1 %v1130_v0 }
  0x50   :  { %928 = vmatpush3.msra.mxu0 %v1257_v55  ;;  %955 = vmatpush3.msra.mxu1 %v1175_v12 }
  0x51   :  { %929 = vmatprep.subr.mxu0 %v1130_v0  ;;  %956 = vmatprep.subr.mxu1 %v1130_v0 }
  0x52   :  { %930 = vmatpush3.msra.mxu0 %v1271_v62  ;;  %957 = vmatpush3.msra.mxu1 %v1184_v17 }
  0x53   :  { %931 = vmatprep.subr.mxu0 %v1130_v0  ;;  %958 = vmatprep.subr.mxu1 %v1130_v0 }
  0x54   :  { %932 = vmatpush3.msra.mxu0 %v1285_v9  ;;  %959 = vmatpush3.msra.mxu1 %v1200_v25 }
  0x55   :  { %933 = vmatprep.subr.mxu0 %v1130_v0  ;;  %960 = vmatprep.subr.mxu1 %v1130_v0 }
  0x56   :  { %934 = vmatpush3.msra.mxu0 %v1300_v32  ;;  %961 = vmatpush3.msra.mxu1 %v1204_v28 }
  0x57   :  { %935 = vmatprep.subr.mxu0 %v1130_v0  ;;  %962 = vmatprep.subr.mxu1 %v1130_v0 }
  0x58   :  { %936 = vmatpush3.msra.mxu0 %v1312_v39  ;;  %963 = vmatpush3.msra.mxu1 %v1224_v36 }
  0x59   :  { %937 = vmatprep.subr.mxu0 %v1130_v0  ;;  %964 = vmatprep.subr.mxu1 %v1130_v0 }
  0x5a   :  { %938 = vmatpush3.msra.mxu0 %v1323_v51  ;;  %965 = vmatpush3.msra.mxu1 %v1232_v42 }
  0x5b   :  { %939 = vmatprep.subr.mxu0 %v1130_v0  ;;  %966 = vmatprep.subr.mxu1 %v1130_v0 }
  0x5c   :  { %940 = vmatpush3.msra.mxu0 %v1333_v58  ;;  %941 = vmatprep.mubr.msk.f32.mxu0 %vm1131_vm0, %v1130_v0 }
  0x5d   :  { %967 = vmatpush3.msra.mxu1 %v1249_v49  ;;  %942 = vmatmul.mubr.f32.vlgmr.msra.gmra.mxu0 %v1297_v31 }
  0x5e   :  { %968 = vmatprep.subr.mxu1 %v1130_v0  ;;  %979 = vmatprep.subr.mxu0 %v1130_v0 }
  0x5f   :  { %969 = vmatpush3.msra.mxu1 %v1268_v60  ;;  %980 = vmatpush3.msra.mxu0 %v153_v22 }
  0x60   :  { %970 = vmatprep.subr.mxu1 %v1130_v0  ;;  %981 = vmatprep.subr.mxu0 %v1130_v0 }
  0x61   :  { %971 = vmatpush3.msra.mxu1 %v1275_v63  ;;  %982 = vmatpush3.msra.mxu0 %v160_v23 }
  0x62   :  { %972 = vmatprep.subr.mxu1 %v1130_v0  ;;  %983 = vmatprep.subr.mxu0 %v1130_v0 }
  0x63   :  { %973 = vmatpush3.msra.mxu1 %v1292_v14  ;;  %984 = vmatpush3.msra.mxu0 %v167_v24 }
  0x64   :  { %974 = vmatprep.subr.mxu1 %v1130_v0  ;;  %985 = vmatprep.subr.mxu0 %v1130_v0 }
  0x65   :  { %975 = vmatpush3.msra.mxu1 %v1304_v33  ;;  %976 = vmatprep.mubr.msk.f32.mxu1 %vm1131_vm0, %v1130_v0 }
  0x66   :  { %986 = vmatpush3.msra.mxu0 %v174_v27  ;;  %977 = vmatmul.mubr.f32.vlgmr.msra.gmra.mxu1 %v142_v45 }
  0x67   :  { %987 = vmatprep.subr.mxu0 %v1130_v0  ;;  %1014 = vmatprep.subr.mxu1 %v1130_v0 }
  0x68   :  { %988 = vmatpush3.msra.mxu0 %v181_v29  ;;  %1015 = vmatpush3.msra.mxu1 %v1165_v4 }
  0x69   :  { %989 = vmatprep.subr.mxu0 %v1130_v0  ;;  %1016 = vmatprep.subr.mxu1 %v1130_v0 }
  0x6a   :  { %990 = vmatpush3.msra.mxu0 %v188_v40  ;;  %1017 = vmatpush3.msra.mxu1 %v1167_v5 }
  0x6b   :  { %991 = vmatprep.subr.mxu0 %v1130_v0  ;;  %1018 = vmatprep.subr.mxu1 %v1130_v0 }
  0x6c   :  { %992 = vmatpush3.msra.mxu0 %v195_v46  ;;  %1019 = vmatpush3.msra.mxu1 %v1169_v6 }
  0x6d   :  { %993 = vmatprep.subr.mxu0 %v1130_v0  ;;  %1020 = vmatprep.subr.mxu1 %v1130_v0 }
  0x6e   :  { %994 = vmatpush3.msra.mxu0 %v202_v53  ;;  %1021 = vmatpush3.msra.mxu1 %v1171_v10 }
  0x6f   :  { %995 = vmatprep.subr.mxu0 %v1130_v0  ;;  %1022 = vmatprep.subr.mxu1 %v1130_v0 }
  0x70   :  { %996 = vmatpush3.msra.mxu0 %v209_v56  ;;  %1023 = vmatpush3.msra.mxu1 %v1173_v11 }
  0x71   :  { %997 = vmatprep.subr.mxu0 %v1130_v0  ;;  %1024 = vmatprep.subr.mxu1 %v1130_v0 }
  0x72   :  { %998 = vmatpush3.msra.mxu0 %v216_v7  ;;  %1025 = vmatpush3.msra.mxu1 %v1175_v12 }
  0x73   :  { %999 = vmatprep.subr.mxu0 %v1130_v0  ;;  %1026 = vmatprep.subr.mxu1 %v1130_v0 }
  0x74   :  { %1000 = vmatpush3.msra.mxu0 %v223_v26  ;;  %1027 = vmatpush3.msra.mxu1 %v1184_v17 }
  0x75   :  { %1001 = vmatprep.subr.mxu0 %v1130_v0  ;;  %1028 = vmatprep.subr.mxu1 %v1130_v0 }
  0x76   :  { %1002 = vmatpush3.msra.mxu0 %v230_v38  ;;  %1029 = vmatpush3.msra.mxu1 %v1200_v25 }
  0x77   :  { %1003 = vmatprep.subr.mxu0 %v1130_v0  ;;  %1030 = vmatprep.subr.mxu1 %v1130_v0 }
  0x78   :  { %1004 = vmatpush3.msra.mxu0 %v237_v50  ;;  %1031 = vmatpush3.msra.mxu1 %v1204_v28 }
  0x79   :  { %1005 = vmatprep.subr.mxu0 %v1130_v0  ;;  %1032 = vmatprep.subr.mxu1 %v1130_v0 }
  0x7a   :  { %1006 = vmatpush3.msra.mxu0 %v244_v57  ;;  %1033 = vmatpush3.msra.mxu1 %v1224_v36 }
  0x7b   :  { %1007 = vmatprep.subr.mxu0 %v1130_v0  ;;  %1034 = vmatprep.subr.mxu1 %v1130_v0 }
  0x7c   :  { %1008 = vmatpush3.msra.mxu0 %v251_v3  ;;  %1035 = vmatpush3.msra.mxu1 %v1232_v42  ;;  %v736_v42 = vld [vmem:[%s1534_s1] ss:$0 sm:$0xff] }
  0x7d   :  { %1009 = vmatprep.subr.mxu0 %v1130_v0  ;;  %1036 = vmatprep.subr.mxu1 %v1130_v0  ;;  %v715_v43 = vmul.f32 %v736_v42, %v1245_v48 }
  0x7e   :  { %1010 = vmatpush3.msra.mxu0 %v258_v19  ;;  %1011 = vmatprep.mubr.msk.f32.mxu0 %vm1131_vm0, %v1130_v0 }
  0x7f   :  { %1037 = vmatpush3.msra.mxu1 %v1249_v49  ;;  %1012 = vmatmul.mubr.f32.vlgmr.msra.gmra.mxu0 %v1277_v1 }
  0x80   :  { %1038 = vmatprep.subr.mxu1 %v1130_v0  ;;  %1046 = vmatprep.mubr.msk.f32.mxu1 %vm1131_vm0, %v1130_v0 }
  0x81   :  { %1039 = vmatpush3.msra.mxu1 %v1268_v60 }
  0x82   :  { %1040 = vmatprep.subr.mxu1 %v1130_v0 }
  0x83   :  { %1041 = vmatpush3.msra.mxu1 %v1275_v63 }
  0x84   :  { %1042 = vmatprep.subr.mxu1 %v1130_v0 }
  0x85   :  { %1043 = vmatpush3.msra.mxu1 %v1292_v14 }
  0x86   :  { %1044 = vmatprep.subr.mxu1 %v1130_v0 }
  0x87   :  { %1045 = vmatpush3.msra.mxu1 %v1304_v33 }
  0x88   :  { %1047 = vmatmul.mubr.f32.vlgmr.msra.gmra.mxu1 %v1277_v1 }
  0xfd   :  { %v146_v4 = vpop.f32.mrf.mxu0 }
  0xff   :  { %v873_v5 = vpop.f32.mrf.mxu0 }
 0x104   :  { %v297_v6 = vpop.f32.mrf.mxu1 }
 0x105   :  { %v298_v18 = vadd.f32 %v297_v6, %v146_v4 }
 0x106   :  { %v908_v10 = vpop.f32.mrf.mxu1 }
 0x11d   :  { %v401_v11 = vpop.f32.mrf.mxu0 }
 0x11e   :  { %v402_v21 = vadd.f32 %v401_v11, %v298_v18 }
 0x11f   :  { %v943_v12 = vpop.f32.mrf.mxu0 }
 0x126   :  { %v490_v15 = vpop.f32.mrf.mxu1 }
 0x127   :  { %v491_v22 = vadd.f32 %v490_v15, %v402_v21 }
 0x128   :  { %v978_v16 = vpop.f32.mrf.mxu1 }
 0x13f   :  { %v609_v17 = vpop.f32.mrf.mxu0 }
 0x140   :  { %v610_v23 = vadd.f32 %v609_v17, %v491_v22 }
 0x141   :  { %v1013_v20 = vpop.f32.mrf.mxu0 }
 0x148   :  { %v696_v24 = vpop.f32.mrf.mxu1 }
 0x149   :  { %v697_v0 = vadd.f32 %v696_v24, %v610_v23 }
 0x14a   :  { %v1048_v25 = vpop.f32.mrf.mxu1 }
 0x14b   :  { %1056 = vrsqrt.f32 %v697_v0  ;;  %vm702_vm1 = vcmp.eq.f32.partialorder %v697_v0, inf  ;;  %v705_v29 = vand.u32 2147483648, %v697_v0  ;;  %vm704_vm2 = vcmp.eq.f32.partialorder %v697_v0, 0.0 }
 0x158   :  { %v1057_v27 = vpop.eup %1056 }
 0x159   :  { %v701_v28 = vmul.f32 %v1057_v27, %v697_v0 }
 0x15b   :  { %v703_v30 = vsel %vm702_vm1, %v697_v0, %v701_v28 }
 0x15c   :  { %v706_v35 = vsel %vm704_vm2, %v705_v29, %v703_v30 }
 0x15d   :  { %v707_v36 = vmul.f32 0.17677669, %v706_v35 }
 0x15f   :  { %v716_v40 = vadd.f32 1e-08, %v707_v36 }
 0x161   :  { %1058 = vrcp.f32 %v716_v40 }
 0x16e   :  { %v1059_v46 = vpop.eup %1058 }
 0x16f   :  { %v718_v47 = vmul.f32 %v1059_v46, %v715_v43 }
 0x171   :  { %719 = vst [vmem:[#allocation7] sm:$0xf] %v718_v47 }
 0x172   :  { %1111 = shalt.err (!%p1108_p0)
}
 0x173   :  { %729 = dma.vmem_to_hbm [thread:$0]  %s727_s25, 64, %s1536_s3, [#allocation4]  }
 0x174   :  { %1124 = dma.done.wait [#allocation4], 64  }
 0x175   :  { %1125 = vsyncadd [#allocation4], 4294967232 }
 0x176   :  { %733 = vsyncpa [#allocation3], 1 }
 0x177   :  { %734 = vsyncpa [#allocation6], 1 }
 0x178   :  { %735 = vsyncpa [#allocation4], 1 }

</bundles_post_ra>
